<compile_context>
chip_gen: v5e
topology: v5e:2x2
jax: 0.10.0
libtpu: 0.0.40
codegen_flags: <defaults>
</compile_context>

<pallas_src>
import functools

import jax
import jax.numpy as jnp
import numpy as np
from jax.experimental import pallas as pl
from jax.experimental.pallas import tpu as pltpu


# VMEM sizing: v5e/v6e have 128 MiB physical (16/32 MiB scoped default), v7x only
# 64 MiB physical.  Blocks are sized against a conservative budget and the scoped
# limit is raised explicitly so one set of tiles works on all three generations.
_VMEM_LIMIT_BYTES = 48 * 1024 * 1024
_BLOCK_BUDGET_BYTES = 36 * 1024 * 1024


def _round_up(x: int, m: int) -> int:
    return ((x + m - 1) // m) * m


# --------------------------------------------------------------------------
# Feature probe: single-buffered (grid-invariant) operands
# --------------------------------------------------------------------------

def _probe_copy_kernel(x_ref, o_ref):
    o_ref[...] = x_ref[...]


@functools.lru_cache(maxsize=None)
def _single_buffering_supported() -> bool:
    """Whether this Pallas build accepts pipeline_mode=pl.Buffered(1)."""
    try:
        spec = pl.BlockSpec((8, 128), lambda i: (0, 0), pipeline_mode=pl.Buffered(1))
        out = pl.pallas_call(
            _probe_copy_kernel,
            out_shape=jax.ShapeDtypeStruct((8, 128), jnp.float32),
            grid=(1,),
            in_specs=[spec],
            out_specs=pl.BlockSpec((8, 128), lambda i: (0, 0)),
        )(jnp.zeros((8, 128), jnp.float32))
        jax.block_until_ready(out)
        return True
    except Exception:
        return False


def _resident_spec(block_shape, index_map):
    """BlockSpec for a grid-invariant operand.

    The constant index_map keeps the block resident in VMEM across grid steps;
    Buffered(1) (when supported) drops the otherwise-unused second pipeline
    buffer, halving the operand's VMEM footprint.
    """
    if _single_buffering_supported():
        return pl.BlockSpec(block_shape, index_map, pipeline_mode=pl.Buffered(1))
    return pl.BlockSpec(block_shape, index_map)


# --------------------------------------------------------------------------
# Tile selection (VMEM-budget aware, layout-legal)
# --------------------------------------------------------------------------

def _choose_bs_tile(bs: int, cap: int) -> int:
    """Layout-legal batch tile: the full dim (always legal) or a multiple of 8.

    Tries to give the 'parallel' batch axis >= 2 grid steps so both v7x
    TensorCores get work.
    """
    if bs <= 8:
        return bs                                   # full-dim block
    cap = max(8, (int(cap) // 8) * 8)
    tile = min(cap, (bs // 8) * 8)
    if bs <= tile:                                  # would be a single grid step
        tile = max(8, _round_up(pl.cdiv(bs, 2), 8))
    return tile


def _lastn_bs_tile(bs, d_model, n_classes_pad, x_bytes, w_bytes, w_bufs):
    fixed = d_model * n_classes_pad * w_bytes * w_bufs + 2 * n_classes_pad * 4
    per_row = 2 * d_model * x_bytes + 2 * n_classes_pad * 4   # dbl-buffered x + out
    cap = (_BLOCK_BUDGET_BYTES - fixed) // per_row
    cap = max(8, min(int(cap), 1024))
    return _choose_bs_tile(bs, cap)


def _reduce_tiles(bs, num_patch, d_model, n_classes_pad, x_bytes, w_bytes, w_bufs):
    """bs_tile / patch_tile for the mean/max reduction, solved from the budget:
       2*bs_tile*patch_tile*d_model*x_bytes  (x, double-buffered)
     + d_model*n_classes_pad*w_bytes*w_bufs  (resident weight)
     + bs_tile*d_model*4                      (f32 accumulator)
     + 2*bs_tile*n_classes_pad*4              (double-buffered output)  <= budget
    """
    w_resident = d_model * n_classes_pad * w_bytes * w_bufs + 2 * n_classes_pad * 4
    bs_tile = _choose_bs_tile(bs, 256)
    while True:
        fixed = (w_resident
                 + bs_tile * d_model * 4
                 + 2 * bs_tile * n_classes_pad * 4)
        per_patch_row = 2 * bs_tile * d_model * x_bytes
        cap = (_BLOCK_BUDGET_BYTES - fixed) // per_patch_row
        if cap >= min(8, num_patch) or bs_tile <= 8:
            break
        bs_tile = max(8, (bs_tile // 16) * 8)       # halve, keep multiple of 8
    if num_patch <= max(int(cap), 1):
        patch_tile = num_patch                      # full dim: always layout-legal
    else:
        patch_tile = max(8, (min(int(cap), num_patch) // 8) * 8)
    patch_tile = min(patch_tile, num_patch)
    return bs_tile, patch_tile


# --------------------------------------------------------------------------
# Kernels
# --------------------------------------------------------------------------

def _lastn_head_kernel(x_ref, w_ref, b_ref, o_ref):
    """x_ref: (bs_tile, d_model) already-pooled rows; matmul + bias."""
    xw = x_ref[...].astype(w_ref.dtype)            # feed MXU in the weight dtype (bf16)
    y = jnp.dot(xw, w_ref[...], preferred_element_type=jnp.float32)
    o_ref[...] = (y + b_ref[...]).astype(o_ref.dtype)


def _make_reduce_head_kernel(pooler_type: str, num_patch: int, patch_tile: int,
                             inv_num_patch: float):
    """Gridded reduction over the patch axis ('mean'/'max') fused with the head.

    x is read in its native dtype; the ragged last patch tile (if any) is masked
    in-kernel against the true num_patch; accumulation is f32.
    """
    ragged = (num_patch % patch_tile) != 0

    def kernel(x_ref, w_ref, b_ref, o_ref, acc_ref):
        p = pl.program_id(1)

        @pl.when(p == 0)
        def _init():
            fill = -jnp.inf if pooler_type == "max" else 0.0
            acc_ref[...] = jnp.full(acc_ref.shape, fill, dtype=acc_ref.dtype)

        xb = x_ref[...].astype(jnp.float32)          # (bs_tile, patch_tile, d_model)
        if ragged:
            # Mask patch rows past the true num_patch (garbage read from the
            # out-of-bounds region of the boundary block).
            patch_idx = p * patch_tile + jax.lax.broadcasted_iota(
                jnp.int32, xb.shape, dimension=1)
            fill = 0.0 if pooler_type == "mean" else -jnp.inf
            xb = jnp.where(patch_idx < num_patch, xb, fill)

        if pooler_type == "mean":
            acc_ref[...] += jnp.sum(xb, axis=1)      # f32 accumulation (v5e-safe)
        else:  # max
            acc_ref[...] = jnp.maximum(acc_ref[...], jnp.max(xb, axis=1))

        @pl.when(p == pl.num_programs(1) - 1)
        def _finalize():
            pooled = acc_ref[...]
            if pooler_type == "mean":
                pooled = pooled * inv_num_patch
            y = jnp.dot(pooled.astype(w_ref.dtype), w_ref[...],
                        preferred_element_type=jnp.float32)
            o_ref[...] = (y + b_ref[...]).astype(o_ref.dtype)

    return kernel


# --------------------------------------------------------------------------
# Parameter preparation (one-time; hoisted out of the per-call wrapper)
# --------------------------------------------------------------------------

def prepare_head_params(weight, bias, compute_dtype=jnp.bfloat16):
    """Transform torch-layout Linear params into the kernel layout — do this at
    init, not per forward call.

    weight: [n_classes, in_features], bias: [n_classes]   (nn.Linear layout)
    returns (w_t, b2d):
      w_t : [in_features, n_classes_pad]  in compute_dtype (lane-dense padded)
      b2d : [1, n_classes_pad]            float32
    """
    n_classes, _ = weight.shape
    n_classes_pad = _round_up(n_classes, 128)
    w_t = jnp.transpose(weight).astype(compute_dtype)
    w_t = jnp.pad(w_t, ((0, 0), (0, n_classes_pad - n_classes)))
    b2d = jnp.pad(bias.astype(jnp.float32).reshape(1, n_classes),
                  ((0, 0), (0, n_classes_pad - n_classes)))
    return w_t, b2d


# --------------------------------------------------------------------------
# Forward wrapper
# --------------------------------------------------------------------------

def classification_head(x, w_t, b2d, n_classes, *, n_samples=1,
                        pooler_type="lastN", bs_tile=None, patch_tile=None):
    """
    x   : [bs, num_patch, d_model]   (any float dtype; read in native dtype)
    w_t : [d_model, n_classes_pad]   from prepare_head_params
    b2d : [1, n_classes_pad]         from prepare_head_params
    returns [bs, n_classes] float32 logits
    """
    bs, num_patch, d_model = x.shape
    in_features, n_classes_pad = w_t.shape
    assert in_features == d_model, "prepared weight does not match d_model"
    assert n_classes_pad % 128 == 0 and n_classes <= n_classes_pad

    x_bytes = jnp.dtype(x.dtype).itemsize
    w_bytes = jnp.dtype(w_t.dtype).itemsize
    w_bufs = 1 if _single_buffering_supported() else 2

    if pooler_type == "lastN":
        assert n_samples == 1, (
            "lastN head is only shape-consistent for n_samples == 1 "
            "(inherited from the PyTorch module).")
        if bs_tile is None:
            bs_tile = _lastn_bs_tile(bs, d_model, n_classes_pad,
                                     x_bytes, w_bytes, w_bufs)
        grid = (pl.cdiv(bs, bs_tile),)
        patch_idx = num_patch - n_samples

        if d_model % 128 == 0:
            # Fused slice: the index_map on a lane-collapsed view reads the one
            # needed patch row straight from x (no pooled copy in HBM; the
            # contiguous-minor-dim reshape is metadata-only under jit).
            x_in = x.reshape(bs, num_patch * d_model)
            x_spec = pl.BlockSpec((bs_tile, d_model), lambda i: (i, patch_idx))
        else:
            # d_model not lane-aligned: a d_model-wide block of the collapsed view
            # would break the (8,128) BlockSpec rule, so slice in the wrapper —
            # one native-dtype [bs, d_model] pass, no cast, no pad.
            x_in = x[:, patch_idx, :]
            x_spec = pl.BlockSpec((bs_tile, d_model), lambda i: (i, 0))

        out = pl.pallas_call(
            _lastn_head_kernel,
            out_shape=jax.ShapeDtypeStruct((bs, n_classes_pad), jnp.float32),
            grid_spec=pltpu.PrefetchScalarGridSpec(
                num_scalar_prefetch=0,
                grid=grid,
                in_specs=[
                    x_spec,
                    _resident_spec((d_model, n_classes_pad), lambda i: (0, 0)),
                    _resident_spec((1, n_classes_pad), lambda i: (0, 0)),
                ],
                out_specs=pl.BlockSpec((bs_tile, n_classes_pad), lambda i: (i, 0)),
            ),
            compiler_params=pltpu.CompilerParams(
                dimension_semantics=("parallel",),
                vmem_limit_bytes=_VMEM_LIMIT_BYTES),
        )(x_in, w_t, b2d)

    elif pooler_type in ("mean", "max"):
        auto_bs, auto_pt = _reduce_tiles(bs, num_patch, d_model, n_classes_pad,
                                         x_bytes, w_bytes, w_bufs)
        if bs_tile is None:
            bs_tile = auto_bs
        if patch_tile is None:
            patch_tile = auto_pt
        grid = (pl.cdiv(bs, bs_tile), pl.cdiv(num_patch, patch_tile))
        kernel = _make_reduce_head_kernel(pooler_type, num_patch, patch_tile,
                                          1.0 / float(num_patch))
        out = pl.pallas_call(
            kernel,
            out_shape=jax.ShapeDtypeStruct((bs, n_classes_pad), jnp.float32),
            grid_spec=pltpu.PrefetchScalarGridSpec(
                num_scalar_prefetch=0,
                grid=grid,
                in_specs=[
                    # x in native dtype, no padded HBM copy; ragged tiles are
                    # masked inside the kernel.
                    pl.BlockSpec((bs_tile, patch_tile, d_model),
                                 lambda i, p: (i, p, 0)),
                    _resident_spec((d_model, n_classes_pad), lambda i, p: (0, 0)),
                    _resident_spec((1, n_classes_pad), lambda i, p: (0, 0)),
                ],
                out_specs=pl.BlockSpec((bs_tile, n_classes_pad),
                                       lambda i, p: (i, 0)),
                scratch_shapes=[pltpu.VMEM((bs_tile, d_model), jnp.float32)],
            ),
            compiler_params=pltpu.CompilerParams(
                dimension_semantics=("parallel", "arbitrary"),
                vmem_limit_bytes=_VMEM_LIMIT_BYTES),
        )(x, w_t, b2d)
    else:
        raise ValueError(f"unknown pooler_type {pooler_type!r}")

    # Strip the lane padding on the class axis.
    return out[:, :n_classes]


def init_params(key, d_model, n_classes, n_samples, pooler_type="lastN"):
    """Deterministic nn.Linear-style init (uniform +/- 1/sqrt(fan_in))."""
    in_features = n_samples * d_model if pooler_type == "lastN" else d_model
    kw, kb = jax.random.split(key)
    bound = 1.0 / float(np.sqrt(in_features))
    weight = jax.random.uniform(kw, (n_classes, in_features), jnp.float32,
                                -bound, bound)
    bias = jax.random.uniform(kb, (n_classes,), jnp.float32, -bound, bound)
    return weight, bias


# --------------------------------------------------------------------------
# Self-test
# --------------------------------------------------------------------------

def _q(a64, dtype):
    """Round a float64 host array through the kernel's compute dtype, back to f64."""
    return np.asarray(
        jnp.asarray(np.asarray(a64, np.float32)).astype(dtype).astype(jnp.float32),
        dtype=np.float64)


def _host_ref(x, weight, bias, pooler_type, n_samples, compute_dtype):
    """float64 host reference mirroring the kernel's operand precision."""
    x64 = np.asarray(x, dtype=np.float64)
    if pooler_type == "lastN":
        pooled = x64[:, x64.shape[1] - n_samples, :]
    elif pooler_type == "mean":
        pooled = x64.mean(axis=1)
    else:
        pooled = x64.max(axis=1)
    pq = _q(pooled, compute_dtype)
    wq = _q(np.asarray(weight, np.float64), compute_dtype)
    return pq @ wq.T + np.asarray(bias, np.float64)


if __name__ == "__main__":
    n_samples = 1          # 'lastN' is only shape-consistent for n_samples == 1
    head_dropout = 0.1     # nn.Dropout -> identity at inference; nn.Flatten -> no-op

    base_key = jax.random.PRNGKey(0)

    cases = [
        # tiny shapes straight from the module's forward
        dict(bs=2, num_patch=8, d_model=32, n_classes=8, patch_tile=None),
        # lane-aligned d_model exercises the fused (copy-free) lastN slice; the
        # explicit patch_tile forces a ragged last patch tile (in-kernel mask);
        # bs=16 gives the parallel batch axis two grid steps (v7x dual TC).
        dict(bs=16, num_patch=12, d_model=128, n_classes=5, patch_tile=8),
    ]

    tol = 5e-3
    for ci, c in enumerate(cases):
        kx, kw = jax.random.split(jax.random.fold_in(base_key, ci))
        x = jax.random.normal(kx, (c["bs"], c["num_patch"], c["d_model"]),
                              jnp.float32)

        for pooler in ("lastN", "mean", "max"):
            weight, bias = init_params(kw, c["d_model"], c["n_classes"],
                                       n_samples, pooler)
            for compute_dtype in (jnp.bfloat16, jnp.float32):
                w_t, b2d = prepare_head_params(weight, bias,
                                               compute_dtype=compute_dtype)
                y = classification_head(
                    x, w_t, b2d, c["n_classes"], n_samples=n_samples,
                    pooler_type=pooler, patch_tile=c["patch_tile"])
                y = jax.block_until_ready(y)
                assert y.shape == (c["bs"], c["n_classes"])
                ref = _host_ref(x, weight, bias, pooler, n_samples, compute_dtype)
                err = float(np.max(np.abs(np.asarray(y, np.float64) - ref)))
                assert err <= tol, (
                    f"case {ci} pooler={pooler} "
                    f"dtype={getattr(compute_dtype, '__name__', compute_dtype)}: "
                    f"max abs err {err:.3e} > {tol}")

    print("KERNEL_OK")
</pallas_src>

<mosaic_0001>
module attributes {stable_mosaic.version = 11 : i64} {
  func.func @_probe_copy_kernel(%arg0: i32, %arg1: memref<8x128xf32, #tpu.memory_space<vmem>>, %arg2: memref<8x128xf32, #tpu.memory_space<vmem>>) attributes {dimension_semantics = [#tpu.dimension_semantics<arbitrary>], iteration_bounds = array<i64: 1>, scalar_prefetch = 0 : i64, scratch_operands = 0 : i64, tpu.core_type = #tpu.core_type<tc>, window_params = [{pipeline_mode = #tpu.pipeline_mode<synchronous>, transform_indices = @transform_0, window_bounds = array<i64: 8, 128>}, {pipeline_mode = #tpu.pipeline_mode<synchronous>, transform_indices = @transform_1, window_bounds = array<i64: 8, 128>}]} {
    %c0 = arith.constant 0 : index
    %c0_0 = arith.constant 0 : index
    %0 = vector.load %arg1[%c0, %c0_0] : memref<8x128xf32, #tpu.memory_space<vmem>>, vector<8x128xf32>
    %c0_1 = arith.constant 0 : index
    %c0_2 = arith.constant 0 : index
    %1 = vector.load %arg2[%c0_1, %c0_2] : memref<8x128xf32, #tpu.memory_space<vmem>>, vector<8x128xf32>
    tpu.vector_store %arg2[%c0_1, %c0_2], %0 {strides = array<i32>} : memref<8x128xf32, #tpu.memory_space<vmem>>, vector<8x128xf32>,
    return
  }
  func.func @transform_0(%arg0: i32) -> (i32, i32) {
    %c0_i32 = arith.constant 0 : i32
    %c0_i32_0 = arith.constant 0 : i32
    %c0_i32_1 = arith.constant 0 : i32
    return %c0_i32, %c0_i32_0 : i32, i32
  }
  func.func @transform_1(%arg0: i32) -> (i32, i32) {
    %c0_i32 = arith.constant 0 : i32
    %c0_i32_0 = arith.constant 0 : i32
    %c0_i32_1 = arith.constant 0 : i32
    return %c0_i32, %c0_i32_0 : i32, i32
  }
}

module attributes {stable_mosaic.version = 11 : i64} {
  func.func @_lastn_head_kernel(%arg0: i32, %arg1: memref<2x32xf32, #tpu.memory_space<vmem>>, %arg2: memref<32x128xbf16, #tpu.memory_space<vmem>>, %arg3: memref<1x128xf32, #tpu.memory_space<vmem>>, %arg4: memref<2x128xf32, #tpu.memory_space<vmem>>) attributes {dimension_semantics = [#tpu.dimension_semantics<parallel>], iteration_bounds = array<i64: 1>, scalar_prefetch = 0 : i64, scratch_operands = 0 : i64, tpu.core_type = #tpu.core_type<tc>, window_params = [{transform_indices = @transform_0, window_bounds = array<i64: 2, 32>}, {pipeline_mode = #tpu.pipeline_mode<synchronous>, transform_indices = @transform_1, window_bounds = array<i64: 32, 128>}, {pipeline_mode = #tpu.pipeline_mode<synchronous>, transform_indices = @transform_2, window_bounds = array<i64: 1, 128>}, {transform_indices = @transform_3, window_bounds = array<i64: 2, 128>}]} {
    %c0 = arith.constant 0 : index
    %c0_0 = arith.constant 0 : index
    %0 = vector.load %arg1[%c0, %c0_0] : memref<2x32xf32, #tpu.memory_space<vmem>>, vector<2x32xf32>
    %1 = arith.truncf %0 : vector<2x32xf32> to vector<2x32xbf16>
    %c0_1 = arith.constant 0 : index
    %c0_2 = arith.constant 0 : index
    %2 = vector.load %arg2[%c0_1, %c0_2] : memref<32x128xbf16, #tpu.memory_space<vmem>>, vector<32x128xbf16>
    %cst = arith.constant dense<0.000000e+00> : vector<2x128xf32>
    %3 = tpu.matmul %1, %2, %cst {dimension_numbers = #tpu.dot_dimension_numbers<[1], [0], [0], [1], [0, 0, 1, 1], [], []>} : vector<2x32xbf16>, vector<32x128xbf16>, vector<2x128xf32> -> vector<2x128xf32>
    %c0_3 = arith.constant 0 : index
    %c0_4 = arith.constant 0 : index
    %4 = vector.load %arg3[%c0_3, %c0_4] : memref<1x128xf32, #tpu.memory_space<vmem>>, vector<1x128xf32>
    %5 = vector.broadcast %4 : vector<1x128xf32> to vector<2x128xf32>
    %6 = arith.addf %3, %5 : vector<2x128xf32>
    %c0_5 = arith.constant 0 : index
    %c0_6 = arith.constant 0 : index
    %7 = vector.load %arg4[%c0_5, %c0_6] : memref<2x128xf32, #tpu.memory_space<vmem>>, vector<2x128xf32>
    tpu.vector_store %arg4[%c0_5, %c0_6], %6 {strides = array<i32>} : memref<2x128xf32, #tpu.memory_space<vmem>>, vector<2x128xf32>,
    return
  }
  func.func @transform_0(%arg0: i32) -> (i32, i32) {
    %c0_i32 = arith.constant 0 : i32
    %c0_i32_0 = arith.constant 0 : i32
    return %arg0, %c0_i32 : i32, i32
  }
  func.func @transform_1(%arg0: i32) -> (i32, i32) {
    %c0_i32 = arith.constant 0 : i32
    %c0_i32_0 = arith.constant 0 : i32
    %c0_i32_1 = arith.constant 0 : i32
    return %c0_i32, %c0_i32_0 : i32, i32
  }
  func.func @transform_2(%arg0: i32) -> (i32, i32) {
    %c0_i32 = arith.constant 0 : i32
    %c0_i32_0 = arith.constant 0 : i32
    %c0_i32_1 = arith.constant 0 : i32
    return %c0_i32, %c0_i32_0 : i32, i32
  }
  func.func @transform_3(%arg0: i32) -> (i32, i32) {
    %c0_i32 = arith.constant 0 : i32
    %c0_i32_0 = arith.constant 0 : i32
    return %arg0, %c0_i32 : i32, i32
  }
}

</mosaic_0001>

<bundles_post_ra>
// kernel: tpu_custom_call.1
= control target key start
LH: loop header
LB: loop body
LE: loop exit
PB: predicated region body
PF: predicated region fallthrough
CT: control target
= control target key end

     0   :  { %6 = vsyncpa [#allocation3], 0  ;;  %s114_s0 = inlined_call_operand.hbm [shape: f32[8,128], index: 0, kind: input, shape index: {}]   ;;  %s115_s1 = inlined_call_operand.hbm [shape: f32[8,128], index: 1, kind: output, shape index: {}]  }
   0x1   :  { %7 = vsyncpa [#allocation4], 0  ;;  %s13_s8 = sshll.u32 %s114_s0, 4  ;;  %s96_s9 = smov [#allocation2]   ;;  %s14_s8 = int_to_ptr.hbm [resolvable:$true] %s13_s8 }
   0x2   :  { %s15_s10 = sshll.u32 %s96_s9, 4  ;;  %s16_s10 = int_to_ptr.vmem [resolvable:$true] %s15_s10 }
   0x3   :  { %18 = dma.hbm_to_vmem [thread:$0]  %s14_s8, 128, %s16_s10, [#allocation3]  }
   0x4   :  { %92 = dma.done.wait [#allocation3], 128  }
   0x5   :  { %93 = vsyncadd [#allocation3], 4294967168  ;;  %s97_s11 = smov [#allocation5]   ;;  %s32_s15 = sshll.u32 %s115_s1, 4  ;;  %v23_v0 = vld [vmem:[#allocation2] sm:$0xff]  ;;  %s33_s15 = int_to_ptr.hbm [resolvable:$true] %s32_s15 }
   0x6   :  { %s30_s12 = sshll.u32 %s97_s11, 4  ;;  %24 = vst [vmem:[#allocation5] sm:$0xff] %v23_v0  ;;  %s31_s12 = int_to_ptr.vmem [resolvable:$true] %s30_s12 }
   0x7   :  { %35 = dma.vmem_to_hbm [thread:$0]  %s31_s12, 128, %s33_s15, [#allocation4]  }
   0x8   :  { %94 = dma.done.wait [#allocation4], 128  }
   0x9   :  { %95 = vsyncadd [#allocation4], 4294967168 }
   0xa   :  { %40 = vsyncpa [#allocation3], 1 }
   0xb   :  { %41 = vsyncpa [#allocation4], 1 }

// kernel: tpu_custom_call.1
= control target key start
LH: loop header
LB: loop body
LE: loop exit
PB: predicated region body
PF: predicated region fallthrough
CT: control target
= control target key end

     0   :  { %8 = vsyncpa [#allocation3], 0  ;;  %s236_s0 = inlined_call_operand.hbm [shape: f32[2,32], index: 0, kind: input, shape index: {}]   ;;  %s237_s1 = inlined_call_operand.hbm [shape: bf16[32,128], index: 1, kind: input, shape index: {}]   ;;  %s238_s2 = inlined_call_operand.vmem [shape: f32[1,128], index: 2, kind: input, shape index: {}]   ;;  %s239_s3 = inlined_call_operand.hbm [shape: f32[2,128], index: 3, kind: output, shape index: {}]  }
   0x1   :  { %9 = vsyncpa [#allocation6], 0 }
   0x2   :  { %10 = vsyncpa [#allocation4], 0  ;;  %s16_s14 = sshll.u32 %s236_s0, 4  ;;  %s199_s15 = smov [#allocation2]   ;;  %s17_s14 = int_to_ptr.hbm [resolvable:$true] %s16_s14 }
   0x3   :  { %s18_s16 = sshll.u32 %s199_s15, 4  ;;  %s26_s19 = sshll.u32 %s237_s1, 4  ;;  %s19_s16 = int_to_ptr.vmem [resolvable:$true] %s18_s16  ;;  %s27_s19 = int_to_ptr.hbm [resolvable:$true] %s26_s19 }
   0x4   :  { %21 = dma.hbm_to_vmem [thread:$0]  %s17_s14, 32, %s19_s16, [#allocation3]  }
   0x5   :  { %s200_s20 = smov [#allocation5]   ;;  %s201_s22 = smov 64  }
   0x6   :  { %s28_s21 = sshll.u32 %s200_s20, 4  ;;  %s202_s23 = smov 4   ;;  %s29_s21 = int_to_ptr.vmem [resolvable:$true] %s28_s21 }
   0x7   :  { %34 = dma.hbm_to_vmem [thread:$0]  %s27_s19, 256, %s29_s21, [#allocation6], %s201_s22, %s201_s22, %s202_s23  }
   0x8   :  { %193 = dma.done.wait [#allocation3], 32  }
   0x9   :  { %194 = vsyncadd [#allocation3], 4294967264 }
   0xa   :  { %195 = dma.done.wait [#allocation6], 256  }
   0xb   :  { %196 = vsyncadd [#allocation6], 4294967040  ;;  %v114_v0 = vld [vmem:[#allocation5 + $0x8] sm:$0xff]  ;;  %v113_v1 = vld [vmem:[#allocation5] sm:$0xff]  ;;  %vm68_vm0 = vcmask 261120   ;;  %s203_s24 = smov [#allocation7]  }
   0xc   :  { %78 = vmatpush.bf16.msra.mxu0 %v114_v0  ;;  %v46_v2 = vld [vmem:[#allocation2] sm:$0x3]  ;;  %s91_s25 = sshll.u32 %s203_s24, 4  ;;  %s93_s28 = sshll.u32 %s239_s3, 4  ;;  %s92_s25 = int_to_ptr.vmem [resolvable:$true] %s91_s25  ;;  %s94_s28 = int_to_ptr.hbm [resolvable:$true] %s93_s28 }
   0xd   :  { %v47_v3 = vpack.c.bf16 %v46_v2, %v46_v2  ;;  %v120_v4 = vld [vmem:[%s238_s2] ss:$0 sm:$0xff] }
  0x10   :  { %79 = vmatpush.bf16.msra.mxu0 %v113_v1 }
  0x13   :  { %112 = vmatmul.msk.bf16.vlgmr.msra.gmra.mxu0 %vm68_vm0, %v47_v3 }
  0x90   :  { %v81_v5 = vpop.f32.mrf.mxu0 }
  0x91   :  { %v82_v6 = vadd.f32 %v120_v4, %v81_v5 }
  0x93   :  { %85 = vst [vmem:[#allocation7] sm:$0x3] %v82_v6 }
  0x94   :  { %96 = dma.vmem_to_hbm [thread:$0]  %s92_s25, 32, %s94_s28, [#allocation4]  }
  0x98   :  { %v83_v7 = vpop.f32.mrf.mxu0 }
  0x99   :  { %197 = dma.done.wait [#allocation4], 32  }
  0x9a   :  { %198 = vsyncadd [#allocation4], 4294967264 }
  0x9b   :  { %101 = vsyncpa [#allocation3], 1 }
  0x9c   :  { %102 = vsyncpa [#allocation6], 1 }
  0x9d   :  { %103 = vsyncpa [#allocation4], 1 }

</bundles_post_ra>
